<compile_context>
chip_gen: v7x
topology: tpu7x:2x2x1
jax: 0.10.0
libtpu: 0.0.40
codegen_flags: <defaults>
</compile_context>

<pallas_src>
import jax
import jax.numpy as jnp
from jax import lax
from jax.experimental import pallas as pl
from jax.experimental.pallas import tpu as pltpu


def _conv3x3_matmul_kernel(p_ref, w_ref, b_ref, o_ref):
    """One batch element per grid step, lane-dense (Cout, H*W) layout.

    p_ref: (1, 9*Cin, H*W)  im2col patches (VMEM), spatial on the lane axis
    w_ref: (Cout, 9*Cin)    flattened conv weights (VMEM)
    b_ref: (Cout, 1)        conv bias (VMEM)
    o_ref: (1, Cout, H*W)   output tile (VMEM), spatial on the lane axis
    """
    # Single K = 9*Cin MXU contraction instead of 9 K=Cin matmuls.
    acc = jnp.dot(w_ref[...], p_ref[0], preferred_element_type=jnp.float32)
    acc = acc + b_ref[...]  # (Cout, 1) broadcasts across the lane-dense spatial axis
    o_ref[0] = acc.astype(o_ref.dtype)


@jax.jit
def controller_forward(x_nchw, weight, bias):
    """Forward pass of Controller: y = conv3x3(x), stride 1, pad 1.

    x_nchw : (N, Cin, H, W)   float32
    weight : (Cout, Cin, 3, 3)  (PyTorch OIHW layout)
    bias   : (Cout,)
    returns: (N, Cout, H, W)
    """
    N, Cin, H, W = x_nchw.shape
    Cout = weight.shape[0]
    HW = H * W
    K = Cin * 9

    # im2col once in the wrapper, in NCHW order (no transposes needed anywhere):
    #   patches[n, ci*9 + dy*3 + dx, h*W + w] = x_pad[n, ci, h + dy, w + dx]
    x_pad = jnp.pad(x_nchw, ((0, 0), (0, 0), (1, 1), (1, 1)))
    patches = jnp.stack(
        [x_pad[:, :, dy:dy + H, dx:dx + W] for dy in range(3) for dx in range(3)],
        axis=2,
    ).reshape(N, K, HW)

    # weight.reshape(Cout, K) flattens in the same k = ci*9 + dy*3 + dx order.
    w2d = weight.reshape(Cout, K).astype(x_nchw.dtype)
    b2d = bias.reshape(Cout, 1).astype(jnp.float32)

    out = pl.pallas_call(
        _conv3x3_matmul_kernel,
        out_shape=jax.ShapeDtypeStruct((N, Cout, HW), x_nchw.dtype),
        grid_spec=pltpu.PrefetchScalarGridSpec(
            num_scalar_prefetch=0,
            grid=(N,),
            in_specs=[
                pl.BlockSpec((1, K, HW), lambda n: (n, 0, 0)),
                pl.BlockSpec((Cout, K), lambda n: (0, 0)),
                pl.BlockSpec((Cout, 1), lambda n: (0, 0)),
            ],
            out_specs=pl.BlockSpec((1, Cout, HW), lambda n: (n, 0, 0)),
        ),
        compiler_params=pltpu.CompilerParams(
            dimension_semantics=("parallel",),
        ),
    )(patches, w2d, b2d)

    # (N, Cout, H*W) -> (N, Cout, H, W): pure reshape in NCHW order, no transpose.
    return out.reshape(N, Cout, H, W)


def _reference_conv(x_nchw, weight, bias):
    """Plain-JAX reference (same semantics as nn.Conv2d(k=3, s=1, p=1))."""
    y = lax.conv_general_dilated(
        x_nchw, weight,
        window_strides=(1, 1),
        padding=((1, 1), (1, 1)),
        dimension_numbers=("NCHW", "OIHW", "NCHW"),
    )
    return y + bias[None, :, None, None]


if __name__ == "__main__":
    # Small shapes consistent with the module: in_channels=4, kernel=8 ("kernel" arg).
    N, Cin, H, W = 2, 4, 16, 16
    Cout = 8

    key = jax.random.PRNGKey(0)
    kx, kw = jax.random.split(key)

    x = jax.random.normal(kx, (N, Cin, H, W), dtype=jnp.float32)
    # torch.nn.init.normal_(weight, std=0.01); constant_(bias, 0)
    weight = 0.01 * jax.random.normal(kw, (Cout, Cin, 3, 3), dtype=jnp.float32)
    bias = jnp.zeros((Cout,), dtype=jnp.float32)

    out = controller_forward(x, weight, bias)
    out = jax.block_until_ready(out)

    ref = _reference_conv(x, weight, bias)
    assert out.shape == (N, Cout, H, W)
    assert jnp.allclose(out, ref, atol=1e-5, rtol=1e-5), "mismatch vs reference"

    print("KERNEL_OK")
</pallas_src>

<mosaic_0001>
module attributes {stable_mosaic.version = 11 : i64} {
  func.func @_conv3x3_matmul_kernel(%arg0: i32, %arg1: memref<1x36x256xf32, #tpu.memory_space<vmem>>, %arg2: memref<8x36xf32, #tpu.memory_space<vmem>>, %arg3: memref<8x1xf32, #tpu.memory_space<vmem>>, %arg4: memref<1x8x256xf32, #tpu.memory_space<vmem>>) attributes {dimension_semantics = [#tpu.dimension_semantics<parallel>], iteration_bounds = array<i64: 2>, scalar_prefetch = 0 : i64, scratch_operands = 0 : i64, tpu.core_type = #tpu.core_type<tc>, window_params = [{transform_indices = @transform_0, window_bounds = array<i64: 1, 36, 256>}, {pipeline_mode = #tpu.pipeline_mode<synchronous>, transform_indices = @transform_1, window_bounds = array<i64: 8, 36>}, {pipeline_mode = #tpu.pipeline_mode<synchronous>, transform_indices = @transform_2, window_bounds = array<i64: 8, 1>}, {transform_indices = @transform_3, window_bounds = array<i64: 1, 8, 256>}]} {
    %c0 = arith.constant 0 : index
    %c0_0 = arith.constant 0 : index
    %0 = vector.load %arg2[%c0, %c0_0] : memref<8x36xf32, #tpu.memory_space<vmem>>, vector<8x36xf32>
    %c0_1 = arith.constant 0 : index
    %c0_2 = arith.constant 0 : index
    %c0_3 = arith.constant 0 : index
    %1 = vector.load %arg1[%c0_1, %c0_2, %c0_3] : memref<1x36x256xf32, #tpu.memory_space<vmem>>, vector<1x36x256xf32>
    %2 = vector.shape_cast %1 : vector<1x36x256xf32> to vector<36x256xf32>
    %cst = arith.constant dense<0.000000e+00> : vector<8x256xf32>
    %3 = tpu.matmul %0, %2, %cst {dimension_numbers = #tpu.dot_dimension_numbers<[1], [0], [0], [1], [0, 0, 1, 1], [], []>} : vector<8x36xf32>, vector<36x256xf32>, vector<8x256xf32> -> vector<8x256xf32>
    %c0_4 = arith.constant 0 : index
    %c0_5 = arith.constant 0 : index
    %4 = vector.load %arg3[%c0_4, %c0_5] : memref<8x1xf32, #tpu.memory_space<vmem>>, vector<8x1xf32>
    %5 = vector.broadcast %4 : vector<8x1xf32> to vector<8x256xf32>
    %6 = arith.addf %3, %5 : vector<8x256xf32>
    %c0_6 = arith.constant 0 : index
    %c0_7 = arith.constant 0 : index
    %c0_8 = arith.constant 0 : index
    %7 = vector.load %arg4[%c0_6, %c0_7, %c0_8] : memref<1x8x256xf32, #tpu.memory_space<vmem>>, vector<1x8x256xf32>
    %8 = vector.shape_cast %7 : vector<1x8x256xf32> to vector<8x256xf32>
    %9 = vector.shape_cast %6 : vector<8x256xf32> to vector<1x8x256xf32>
    tpu.vector_store %arg4[%c0_6, %c0_7, %c0_8], %9 {strides = array<i32>} : memref<1x8x256xf32, #tpu.memory_space<vmem>>, vector<1x8x256xf32>,
    return
  }
  func.func @transform_0(%arg0: i32) -> (i32, i32, i32) {
    %c0_i32 = arith.constant 0 : i32
    %c0_i32_0 = arith.constant 0 : i32
    %c0_i32_1 = arith.constant 0 : i32
    return %arg0, %c0_i32, %c0_i32_0 : i32, i32, i32
  }
  func.func @transform_1(%arg0: i32) -> (i32, i32) {
    %c0_i32 = arith.constant 0 : i32
    %c0_i32_0 = arith.constant 0 : i32
    %c0_i32_1 = arith.constant 0 : i32
    return %c0_i32, %c0_i32_0 : i32, i32
  }
  func.func @transform_2(%arg0: i32) -> (i32, i32) {
    %c0_i32 = arith.constant 0 : i32
    %c0_i32_0 = arith.constant 0 : i32
    %c0_i32_1 = arith.constant 0 : i32
    return %c0_i32, %c0_i32_0 : i32, i32
  }
  func.func @transform_3(%arg0: i32) -> (i32, i32, i32) {
    %c0_i32 = arith.constant 0 : i32
    %c0_i32_0 = arith.constant 0 : i32
    %c0_i32_1 = arith.constant 0 : i32
    return %arg0, %c0_i32, %c0_i32_0 : i32, i32, i32
  }
}

</mosaic_0001>

<bundles_post_ra>
// kernel: controller_forward.1
= control target key start
LH: loop header
LB: loop body
LE: loop exit
PB: predicated region body
PF: predicated region fallthrough
CT: control target
= control target key end

     0   :  { %s391_s12 = smov 0   ;;  %s418_s0 = inlined_call_operand.vmem [shape: f32[2,36,256], index: 0, kind: input, shape index: {}]   ;;  %s419_s1 = inlined_call_operand.vmem [shape: f32[8,36], index: 1, kind: input, shape index: {}]   ;;  %s420_s2 = inlined_call_operand.vmem [shape: f32[8,1], index: 2, kind: input, shape index: {}]   ;;  %s421_s3 = inlined_call_operand.vmem [shape: f32[2,8,256], index: 3, kind: output, shape index: {}]  }
   0x1 LB: > { %s327_s13 = sadd.s32 4294967295, %s367_s12   ;;  %p331_p0 = scmp.ge.s32.totalorder %s367_s12, 1  ;;  %s367_s12 = sphi %s391_s12, %s13_s12  }
   0x2   : > { %p137_p1 = scmp.lt.s32.totalorder %s367_s12, 3 }
   0x4   : > { %p138_p2 = pnand %p331_p0, %p137_p1 }
   0x5   : > { %p161_p3 = scmp.lt.s32.totalorder (!%p138_p2), %s327_s13, 1  ;;  %v369_v0 = vmov (!%p138_p2), 0.0   ;;  %v370_v1 = vmov (!%p138_p2), 0   ;;  %v182_v2 = vld [vmem:[%s420_s2] sm:$0xff] (!%p138_p2)  ;;  %vm192_vm0 = vcmask (!%p138_p2), 1043456   ;;  %vm188_vm1 = vcmask (!%p138_p2), 293888  }
   0x6   : > { %141 = sbr.rel (%p138_p2) target bundleno = 246 (0xf6), region = 32  ;;  %263 = vmatprep.mubr.f32.mxu0 (!%p138_p2), %v369_v0  ;;  %360 = vset.pattern.permute.xlu0 (!%p138_p2), %v370_v1  ;;  %v171_v17 = vld [vmem:[%s419_s1] sm:$0xff] (!%p138_p2) }
   0x7   : > { %185 = vperm.xlu0 (!%p138_p2), %360, %v182_v2  }
   0xd   : > { %s423_s13 = smov (!%p161_p3, %s327_s13), 1 }
   0xe   : > { %s349_s16 = smul.u32 80, %s423_s13  ;;  %s340_s22 = sshll.u32 %s423_s13, 4 }
   0xf   : > { %s170_s25 = scalar_lea.vmem %s421_s3, %s340_s22 }
  0x10   : > { %s165_s19 = scalar_lea.vmem %s418_s0, %s349_s16 }
  0x11   : > { %v173_v3 = vld [vmem:[%s165_s19 + $0x8] sm:$0xff]  ;;  %v175_v4 = vld [vmem:[%s165_s19 + $0x18] sm:$0xff]  ;;  %v172_v5 = vld [vmem:[%s165_s19] sm:$0xff] }
  0x12   : > { %v341_v6 = vpack.c.bf16 %v175_v4, %v173_v3  ;;  %v174_v7 = vld [vmem:[%s165_s19 + $0x10] sm:$0xff]  ;;  %v177_v8 = vld [vmem:[%s165_s19 + $0x28] sm:$0xff]  ;;  %v179_v9 = vld [vmem:[%s165_s19 + $0x38] sm:$0xff] }
  0x13   : > { %v343_v10 = vpack.c.bf16 %v174_v7, %v172_v5  ;;  %v345_v11 = vpack.c.bf16 %v179_v9, %v177_v8  ;;  %v176_v12 = vld [vmem:[%s165_s19 + $0x20] sm:$0xff]  ;;  %v178_v13 = vld [vmem:[%s165_s19 + $0x30] sm:$0xff]  ;;  %v181_v15 = vld [vmem:[%s165_s19 + $0x48] sm:$0xf] }
  0x14   : > { %342 = vmatprep.subr.bf16.mxu0 %v341_v6  ;;  %v347_v14 = vpack.c.bf16 %v178_v13, %v176_v12  ;;  %v180_v16 = vld [vmem:[%s165_s19 + $0x40] sm:$0xf] }
  0x15   : > { %344 = vmatpush1.bf16.msra.mxu0 %v343_v10 }
  0x16   : > { %346 = vmatprep.subr.bf16.mxu0 %v345_v11 }
  0x19   : > { %348 = vmatpush1.bf16.msra.mxu0 %v347_v14 }
  0x1a   : > { %335 = vmatprep.subr.msk.mxu0 %vm192_vm0, %v181_v15 }
  0x1d   : > { %336 = vmatpush1.msk.msra.mxu0 %vm192_vm0, %v180_v16 }
  0x1e   : > { %337 = vmatmul.mubr.msk.f32.vlgmr.msra.gmra.mrb[0].mxu0 %vm188_vm1, %v171_v17 }
  0x86   : > { %v186_v18 = vpop.permute.xlu0 %185 }
  0xf1   : > { %v265_v19 = vpop.f32.mrb[0].mxu0 }
  0xf2   : > { %v266_v20 = vadd.f32 %v265_v19, %v186_v18  ;;  %v267_v21 = vpop.f32.mrb[1].mxu0 }
  0xf3   : > { %v268_v22 = vadd.f32 %v267_v21, %v186_v18 }
  0xf4   : > { %270 = vst [vmem:[%s170_s25] sm:$0xff] %v266_v20 }
  0xf5   : > { %271 = vst [vmem:[%s170_s25 + $0x8] sm:$0xff] %v268_v22 }
  0xf6 PF: > { %s13_s12 = sadd.s32 1, %s367_s12  }
  0xf7   : > { %p10_p4 = scmp.ge.s32.totalorder %s13_s12, 4  }
  0xf9   :  { %12 = sbr.rel (!%p10_p4) target bundleno = 1 (0x1), region = 62 }

</bundles_post_ra>
